<compile_context>
chip_gen: v5e
topology: v5e:2x2
jax: 0.10.0
libtpu: 0.0.40
codegen_flags: <defaults>
</compile_context>

<pallas_src>
import functools
import itertools

import numpy as np
import jax
import jax.numpy as jnp
from jax import lax
from jax.experimental import pallas as pl
from jax.experimental.pallas import tpu as pltpu


# ---------------------------------------------------------------------------
# Pallas kernels
# ---------------------------------------------------------------------------
def _teacher_prep_kernel(t_ref, c_ref, that_ref, newc_ref,
                         *, inv_teacher_temp, momentum, inv_count):
    """Teacher: softmax((t - c)/temp) then L2-normalize, emitted as bf16.
    The softmax denominator cancels under L2 normalization, so only
    exp(shifted logits) is computed. Also fuses the center EMA update
    (the teacher tile is already resident in VMEM)."""
    i = pl.program_id(0)
    t = t_ref[...].astype(jnp.float32)

    logits = (t - c_ref[...]) * inv_teacher_temp
    logits = logits - jnp.max(logits, axis=-1, keepdims=True)
    e = jnp.exp(logits)
    inv_norm = lax.rsqrt(jnp.sum(e * e, axis=-1, keepdims=True) + 1e-24)
    that_ref[...] = (e * inv_norm).astype(that_ref.dtype)

    # fused center update: accumulate row-sum across the grid, momentum at end
    @pl.when(i == 0)
    def _():
        newc_ref[...] = jnp.zeros_like(newc_ref)

    newc_ref[...] += jnp.sum(t, axis=0, keepdims=True)

    @pl.when(i == pl.num_programs(0) - 1)
    def _():
        newc_ref[...] = (c_ref[...] * momentum
                         + newc_ref[...] * ((1.0 - momentum) * inv_count))


def _student_prep_kernel(s_ref, shat_ref):
    """Student: L2-normalize rows, emitted as bf16. The /student_temp divide
    is dropped — cosine similarity is scale-invariant."""
    s = s_ref[...].astype(jnp.float32)
    inv_norm = lax.rsqrt(jnp.sum(s * s, axis=-1, keepdims=True) + 1e-24)
    shat_ref[...] = (s * inv_norm).astype(shat_ref.dtype)


def _loss_kernel(that_ref, shat_ref, wp_ref, wn_ref, out_ref):
    """cos tile = t_hat @ s_hat^T (bf16 in, f32 acc on MXU); weighted masked
    aggregation of |1 - cos| (positive pairs) and |cos| (negative pairs),
    reduced over the student axis, accumulated across the j grid axis."""
    j = pl.program_id(1)

    @pl.when(j == 0)
    def _():
        out_ref[...] = jnp.zeros_like(out_ref)

    cos = lax.dot_general(that_ref[...], shat_ref[...],
                          (((1,), (1,)), ((), ())),
                          preferred_element_type=jnp.float32)   # (tm, tn)
    contrib = wp_ref[...] * jnp.abs(1.0 - cos) + wn_ref[...] * jnp.abs(cos)
    out_ref[...] += jnp.sum(contrib, axis=-1, keepdims=True)    # (tm, 1)


# ---------------------------------------------------------------------------
# Wrappers
# ---------------------------------------------------------------------------
def _round_up(x, m):
    return ((x + m - 1) // m) * m


_TM_MAX = 256   # teacher-row tile (sublane axis; multiple of 16 for bf16)
_TN_MAX = 512   # student-row tile (lane axis of the weight / cos tiles)


@functools.partial(
    jax.jit,
    static_argnames=("teacher_temp", "momentum", "world_size", "tm", "tn"))
def _dino_loss_impl(teacher, center, student, w_pos, w_neg,
                    *, teacher_temp, momentum, world_size, tm, tn):
    Tr, D = teacher.shape
    Sr, _ = student.shape
    Tr_pad, Sr_pad = w_pos.shape

    if Tr_pad != Tr:
        teacher = jnp.pad(teacher, ((0, Tr_pad - Tr), (0, 0)))
    if Sr_pad != Sr:
        student = jnp.pad(student, ((0, Sr_pad - Sr), (0, 0)))

    n_i = Tr_pad // tm
    n_j = Sr_pad // tn

    # ---- kernel 1: teacher prep + fused center EMA update ------------------
    t_hat, new_center = pl.pallas_call(
        functools.partial(_teacher_prep_kernel,
                          inv_teacher_temp=1.0 / teacher_temp,
                          momentum=momentum,
                          inv_count=1.0 / (Tr * world_size)),
        out_shape=(jax.ShapeDtypeStruct((Tr_pad, D), jnp.bfloat16),
                   jax.ShapeDtypeStruct((1, D), jnp.float32)),
        grid_spec=pltpu.PrefetchScalarGridSpec(
            num_scalar_prefetch=0, grid=(n_i,),
            in_specs=[pl.BlockSpec((tm, D), lambda i: (i, 0)),
                      pl.BlockSpec((1, D), lambda i: (0, 0))],
            out_specs=[pl.BlockSpec((tm, D), lambda i: (i, 0)),
                       pl.BlockSpec((1, D), lambda i: (0, 0))]),
        compiler_params=pltpu.CompilerParams(
            dimension_semantics=("arbitrary",)),
    )(teacher, center)

    # ---- kernel 2: student prep ---------------------------------------------
    s_hat = pl.pallas_call(
        _student_prep_kernel,
        out_shape=jax.ShapeDtypeStruct((Sr_pad, D), jnp.bfloat16),
        grid_spec=pltpu.PrefetchScalarGridSpec(
            num_scalar_prefetch=0, grid=(n_j,),
            in_specs=[pl.BlockSpec((tn, D), lambda j: (j, 0))],
            out_specs=pl.BlockSpec((tn, D), lambda j: (j, 0))),
        compiler_params=pltpu.CompilerParams(
            dimension_semantics=("parallel",)),
    )(student)

    # ---- kernel 3: tiled cosine matmul + masked loss reduction --------------
    row_partial = pl.pallas_call(
        _loss_kernel,
        out_shape=jax.ShapeDtypeStruct((Tr_pad, 1), jnp.float32),
        grid_spec=pltpu.PrefetchScalarGridSpec(
            num_scalar_prefetch=0, grid=(n_i, n_j),
            in_specs=[pl.BlockSpec((tm, D), lambda i, j: (i, 0)),
                      pl.BlockSpec((tn, D), lambda i, j: (j, 0)),
                      pl.BlockSpec((tm, tn), lambda i, j: (i, j)),
                      pl.BlockSpec((tm, tn), lambda i, j: (i, j))],
            out_specs=pl.BlockSpec((tm, 1), lambda i, j: (i, 0))),
        compiler_params=pltpu.CompilerParams(
            dimension_semantics=("parallel", "arbitrary")),
    )(t_hat, s_hat, w_pos, w_neg)

    return jnp.sum(row_partial), new_center


# ---------------------------------------------------------------------------
# DINOLoss forward (host glue mirroring the PyTorch reference)
# ---------------------------------------------------------------------------
class DINOLossPallas:
    def __init__(self, out_dim, ncrops, warmup_teacher_temp, teacher_temp,
                 warmup_teacher_temp_epochs, nepochs,
                 student_temp=0.1, center_momentum=0.9,
                 batch_size_per_gpu=2):
        self.student_temp = student_temp
        self.center_momentum = center_momentum
        self.ncrops = ncrops
        self.out_dim = out_dim
        self.batch_size_per_gpu = batch_size_per_gpu
        self.center = jnp.zeros((1, out_dim), dtype=jnp.float32)
        self.teacher_temp_schedule = np.concatenate((
            np.linspace(warmup_teacher_temp, teacher_temp,
                        warmup_teacher_temp_epochs),
            np.ones(nepochs - warmup_teacher_temp_epochs) * teacher_temp))

    def _build_weights(self, items_per_outfit, negative_pairs, Tr_pad, Sr_pad):
        """Fold the reference's per-pair pos/neg bookkeeping and per-outfit
        normalization into two (Tr_pad, Sr_pad) weight matrices so that
        loss = sum(w_pos*|1-cos| + w_neg*|cos|)."""
        m, n = 5, 2
        Nt = int(np.sum(items_per_outfit))
        offsets = np.concatenate(([0], np.cumsum(items_per_outfit))).astype(int)
        B = self.batch_size_per_gpu
        w_pos = np.zeros((Tr_pad, Sr_pad), dtype=np.float32)
        w_neg = np.zeros((Tr_pad, Sr_pad), dtype=np.float32)
        for o in range(len(items_per_outfit)):
            if o >= B:   # reference only aggregates the first B outfits
                continue
            lo, hi = int(offsets[o]), int(offsets[o + 1])
            n_o = int(items_per_outfit[o])
            pw = 1.0 / ((n_o - m) * (n_o - m - 1) * B)
            nw = 1.0 / (2 * n * m * B)
            negset = set(negative_pairs[o])
            ii, jj = np.meshgrid(np.arange(lo, hi), np.arange(lo, hi),
                                 indexing="ij")
            is_neg = np.array([[(a, b) in negset for b in range(lo, hi)]
                               for a in range(lo, hi)])
            for t_idx in range(2):
                for s_idx in range(self.ncrops):
                    valid = ii != jj
                    if s_idx == t_idx:
                        valid = valid & ~(jj < ii)
                    rs = slice(t_idx * Nt + lo, t_idx * Nt + hi)
                    cs = slice(s_idx * Nt + lo, s_idx * Nt + hi)
                    w_pos[rs, cs] += np.where(valid & ~is_neg, pw, 0.0)
                    w_neg[rs, cs] += np.where(valid & is_neg, nw, 0.0)
        return w_pos, w_neg

    def forward(self, student_output, teacher_output, items_per_outfit,
                epoch, targets_mixup):
        temp = 0.02   # hard-coded in the reference forward (schedule unused)

        n_outfits = len(items_per_outfit)
        Nt = int(np.sum(items_per_outfit))
        Tr = 2 * Nt
        Sr = self.ncrops * Nt
        assert teacher_output.shape[0] == Tr
        assert student_output.shape[0] == Sr
        assert n_outfits >= self.batch_size_per_gpu

        # ---- negative-pair sampling (mirrors the reference, np.random) -----
        S = [[] for _ in range(n_outfits)]
        N = []
        negative_pairs = [[] for _ in range(n_outfits)]
        abs_index = 0
        for outfit_idx in range(n_outfits):
            n_items = int(items_per_outfit[outfit_idx])
            N.append([abs_index + n_items - 1, abs_index + n_items - 2])
            index = int(np.random.randint(abs_index, abs_index + n_items - 2))
            S[outfit_idx].append(index)
            while index in S[outfit_idx]:
                index = int(np.random.randint(abs_index,
                                              abs_index + n_items - 2))
            S[outfit_idx].append(index)
            negative_pairs[outfit_idx] = [
                (int(a), int(b)) for a, b in
                itertools.product(S[outfit_idx], N[outfit_idx])]
            abs_index += n_items

        # ---- tile sizes / lane-dense padding --------------------------------
        if Tr <= _TM_MAX:
            Tr_pad = _round_up(Tr, 16)
            tm = Tr_pad
        else:
            Tr_pad = _round_up(Tr, _TM_MAX)
            tm = _TM_MAX
        if Sr <= _TN_MAX:
            Sr_pad = _round_up(Sr, 128)
            tn = Sr_pad
        else:
            Sr_pad = _round_up(Sr, _TN_MAX)
            tn = _TN_MAX

        w_pos, w_neg = self._build_weights(items_per_outfit, negative_pairs,
                                           Tr_pad, Sr_pad)

        # TODO(synk): dist.all_reduce of the batch center across hosts has no
        # single-kernel Pallas equivalent here; world_size=1 semantics used.
        loss, new_center = _dino_loss_impl(
            teacher_output, self.center, student_output,
            jnp.asarray(w_pos), jnp.asarray(w_neg),
            teacher_temp=temp, momentum=self.center_momentum,
            world_size=1, tm=tm, tn=tn)
        self.center = new_center
        return loss


# ---------------------------------------------------------------------------
# Main
# ---------------------------------------------------------------------------
if __name__ == "__main__":
    np.random.seed(0)

    out_dim = 128
    ncrops = 3
    items_per_outfit = [8, 8]            # 2 outfits, 8 items each
    batch_size_per_gpu = len(items_per_outfit)
    n_items_total = sum(items_per_outfit)

    key = jax.random.PRNGKey(0)
    k_t, k_s = jax.random.split(key)
    teacher_output = jax.random.normal(
        k_t, (2 * n_items_total, out_dim), dtype=jnp.float32)
    student_output = jax.random.normal(
        k_s, (ncrops * n_items_total, out_dim), dtype=jnp.float32)

    loss_mod = DINOLossPallas(
        out_dim=out_dim, ncrops=ncrops,
        warmup_teacher_temp=0.04, teacher_temp=0.04,
        warmup_teacher_temp_epochs=0, nepochs=10,
        student_temp=0.1, center_momentum=0.9,
        batch_size_per_gpu=batch_size_per_gpu)

    out_loss = loss_mod.forward(student_output, teacher_output,
                                items_per_outfit, epoch=0, targets_mixup=None)
    out_loss = jax.block_until_ready(out_loss)
    jax.block_until_ready(loss_mod.center)
    assert bool(jnp.isfinite(out_loss)), "non-finite loss"
    print("KERNEL_OK")
</pallas_src>

<mosaic_0001>
module attributes {stable_mosaic.version = 11 : i64} {
  func.func @_student_prep_kernel(%arg0: i32, %arg1: memref<128x128xf32, #tpu.memory_space<vmem>>, %arg2: memref<128x128xbf16, #tpu.memory_space<vmem>>) attributes {dimension_semantics = [#tpu.dimension_semantics<parallel>], iteration_bounds = array<i64: 1>, scalar_prefetch = 0 : i64, scratch_operands = 0 : i64, tpu.core_type = #tpu.core_type<tc>, window_params = [{transform_indices = @transform_0, window_bounds = array<i64: 128, 128>}, {transform_indices = @transform_1, window_bounds = array<i64: 128, 128>}]} {
    %c0 = arith.constant 0 : index
    %c0_0 = arith.constant 0 : index
    %0 = vector.load %arg1[%c0, %c0_0] : memref<128x128xf32, #tpu.memory_space<vmem>>, vector<128x128xf32>
    %1 = arith.mulf %0, %0 : vector<128x128xf32>
    %cst = arith.constant dense<0.000000e+00> : vector<128xf32>
    %2 = vector.multi_reduction <add>, %1, %cst [1] : vector<128x128xf32> to vector<128xf32>
    %3 = vector.shape_cast %2 : vector<128xf32> to vector<128x1xf32>
    %cst_1 = arith.constant 1.000000e-24 : f32
    %4 = vector.broadcast %cst_1 : f32 to vector<128x1xf32>
    %5 = arith.addf %3, %4 : vector<128x1xf32>
    %6 = math.rsqrt %5 : vector<128x1xf32>
    %7 = vector.broadcast %6 : vector<128x1xf32> to vector<128x128xf32>
    %8 = arith.mulf %0, %7 : vector<128x128xf32>
    %9 = arith.truncf %8 : vector<128x128xf32> to vector<128x128xbf16>
    %c0_2 = arith.constant 0 : index
    %c0_3 = arith.constant 0 : index
    %10 = vector.load %arg2[%c0_2, %c0_3] : memref<128x128xbf16, #tpu.memory_space<vmem>>, vector<128x128xbf16>
    tpu.vector_store %arg2[%c0_2, %c0_3], %9 {strides = array<i32>} : memref<128x128xbf16, #tpu.memory_space<vmem>>, vector<128x128xbf16>,
    return
  }
  func.func @transform_0(%arg0: i32) -> (i32, i32) {
    %c0_i32 = arith.constant 0 : i32
    %c0_i32_0 = arith.constant 0 : i32
    return %arg0, %c0_i32 : i32, i32
  }
  func.func @transform_1(%arg0: i32) -> (i32, i32) {
    %c0_i32 = arith.constant 0 : i32
    %c0_i32_0 = arith.constant 0 : i32
    return %arg0, %c0_i32 : i32, i32
  }
}

module attributes {stable_mosaic.version = 11 : i64} {
  func.func @_teacher_prep_kernel(%arg0: i32, %arg1: memref<32x128xf32, #tpu.memory_space<vmem>>, %arg2: memref<1x128xf32, #tpu.memory_space<vmem>>, %arg3: memref<32x128xbf16, #tpu.memory_space<vmem>>, %arg4: memref<1x128xf32, #tpu.memory_space<vmem>>) attributes {dimension_semantics = [#tpu.dimension_semantics<arbitrary>], iteration_bounds = array<i64: 1>, scalar_prefetch = 0 : i64, scratch_operands = 0 : i64, tpu.core_type = #tpu.core_type<tc>, window_params = [{transform_indices = @transform_0, window_bounds = array<i64: 32, 128>}, {pipeline_mode = #tpu.pipeline_mode<synchronous>, transform_indices = @transform_1, window_bounds = array<i64: 1, 128>}, {transform_indices = @transform_2, window_bounds = array<i64: 32, 128>}, {pipeline_mode = #tpu.pipeline_mode<synchronous>, transform_indices = @transform_3, window_bounds = array<i64: 1, 128>}]} {
    %c0 = arith.constant 0 : index
    %c0_0 = arith.constant 0 : index
    %0 = vector.load %arg1[%c0, %c0_0] : memref<32x128xf32, #tpu.memory_space<vmem>>, vector<32x128xf32>
    %c0_1 = arith.constant 0 : index
    %c0_2 = arith.constant 0 : index
    %1 = vector.load %arg2[%c0_1, %c0_2] : memref<1x128xf32, #tpu.memory_space<vmem>>, vector<1x128xf32>
    %2 = vector.broadcast %1 : vector<1x128xf32> to vector<32x128xf32>
    %3 = arith.subf %0, %2 : vector<32x128xf32>
    %cst = arith.constant 5.000000e+01 : f32
    %4 = vector.broadcast %cst : f32 to vector<32x128xf32>
    %5 = arith.mulf %3, %4 : vector<32x128xf32>
    %cst_3 = arith.constant dense<0xFF800000> : vector<32xf32>
    %6 = vector.multi_reduction <maximumf>, %5, %cst_3 [1] : vector<32x128xf32> to vector<32xf32>
    %7 = vector.shape_cast %6 : vector<32xf32> to vector<32x1xf32>
    %8 = vector.broadcast %7 : vector<32x1xf32> to vector<32x128xf32>
    %9 = arith.subf %5, %8 : vector<32x128xf32>
    %10 = math.exp %9 : vector<32x128xf32>
    %11 = arith.mulf %10, %10 : vector<32x128xf32>
    %cst_4 = arith.constant dense<0.000000e+00> : vector<32xf32>
    %12 = vector.multi_reduction <add>, %11, %cst_4 [1] : vector<32x128xf32> to vector<32xf32>
    %13 = vector.shape_cast %12 : vector<32xf32> to vector<32x1xf32>
    %cst_5 = arith.constant 1.000000e-24 : f32
    %14 = vector.broadcast %cst_5 : f32 to vector<32x1xf32>
    %15 = arith.addf %13, %14 : vector<32x1xf32>
    %16 = math.rsqrt %15 : vector<32x1xf32>
    %17 = vector.broadcast %16 : vector<32x1xf32> to vector<32x128xf32>
    %18 = arith.mulf %10, %17 : vector<32x128xf32>
    %19 = arith.truncf %18 : vector<32x128xf32> to vector<32x128xbf16>
    %c0_6 = arith.constant 0 : index
    %c0_7 = arith.constant 0 : index
    %20 = vector.load %arg3[%c0_6, %c0_7] : memref<32x128xbf16, #tpu.memory_space<vmem>>, vector<32x128xbf16>
    tpu.vector_store %arg3[%c0_6, %c0_7], %19 {strides = array<i32>} : memref<32x128xbf16, #tpu.memory_space<vmem>>, vector<32x128xbf16>,
    %c0_i32 = arith.constant 0 : i32
    %21 = arith.cmpi eq, %arg0, %c0_i32 : i32
    %22 = arith.extui %21 : i1 to i32
    %c0_i32_8 = arith.constant 0 : i32
    %23 = arith.cmpi ne, %22, %c0_i32_8 : i32
    scf.if %23 {
      %cst_16 = arith.constant 0.000000e+00 : f32
      %32 = vector.broadcast %cst_16 : f32 to vector<1x128xf32>
      %c0_17 = arith.constant 0 : index
      %c0_18 = arith.constant 0 : index
      %33 = vector.load %arg4[%c0_17, %c0_18] : memref<1x128xf32, #tpu.memory_space<vmem>>, vector<1x128xf32>
      tpu.vector_store %arg4[%c0_17, %c0_18], %32 {strides = array<i32>} : memref<1x128xf32, #tpu.memory_space<vmem>>, vector<1x128xf32>,
    } else {
    }
    %c0_9 = arith.constant 0 : index
    %c0_10 = arith.constant 0 : index
    %24 = vector.load %arg4[%c0_9, %c0_10] : memref<1x128xf32, #tpu.memory_space<vmem>>, vector<1x128xf32>
    %cst_11 = arith.constant dense<0.000000e+00> : vector<128xf32>
    %25 = vector.multi_reduction <add>, %0, %cst_11 [0] : vector<32x128xf32> to vector<128xf32>
    %26 = vector.shape_cast %25 : vector<128xf32> to vector<1x128xf32>
    %27 = arith.addf %24, %26 : vector<1x128xf32>
    %c0_12 = arith.constant 0 : index
    %c0_13 = arith.constant 0 : index
    %28 = vector.load %arg4[%c0_12, %c0_13] : memref<1x128xf32, #tpu.memory_space<vmem>>, vector<1x128xf32>
    tpu.vector_store %arg4[%c0_12, %c0_13], %27 {strides = array<i32>} : memref<1x128xf32, #tpu.memory_space<vmem>>, vector<1x128xf32>,
    %c0_i32_14 = arith.constant 0 : i32
    %29 = arith.cmpi eq, %arg0, %c0_i32_14 : i32
    %30 = arith.extui %29 : i1 to i32
    %c0_i32_15 = arith.constant 0 : i32
    %31 = arith.cmpi ne, %30, %c0_i32_15 : i32
    scf.if %31 {
      %c0_16 = arith.constant 0 : index
      %c0_17 = arith.constant 0 : index
      %32 = vector.load %arg2[%c0_16, %c0_17] : memref<1x128xf32, #tpu.memory_space<vmem>>, vector<1x128xf32>
      %cst_18 = arith.constant 0.899999976 : f32
      %33 = vector.broadcast %cst_18 : f32 to vector<1x128xf32>
      %34 = arith.mulf %32, %33 : vector<1x128xf32>
      %c0_19 = arith.constant 0 : index
      %c0_20 = arith.constant 0 : index
      %35 = vector.load %arg4[%c0_19, %c0_20] : memref<1x128xf32, #tpu.memory_space<vmem>>, vector<1x128xf32>
      %cst_21 = arith.constant 3.125000e-03 : f32
      %36 = vector.broadcast %cst_21 : f32 to vector<1x128xf32>
      %37 = arith.mulf %35, %36 : vector<1x128xf32>
      %38 = arith.addf %34, %37 : vector<1x128xf32>
      %c0_22 = arith.constant 0 : index
      %c0_23 = arith.constant 0 : index
      %39 = vector.load %arg4[%c0_22, %c0_23] : memref<1x128xf32, #tpu.memory_space<vmem>>, vector<1x128xf32>
      tpu.vector_store %arg4[%c0_22, %c0_23], %38 {strides = array<i32>} : memref<1x128xf32, #tpu.memory_space<vmem>>, vector<1x128xf32>,
    } else {
    }
    return
  }
  func.func @transform_0(%arg0: i32) -> (i32, i32) {
    %c0_i32 = arith.constant 0 : i32
    %c0_i32_0 = arith.constant 0 : i32
    return %arg0, %c0_i32 : i32, i32
  }
  func.func @transform_1(%arg0: i32) -> (i32, i32) {
    %c0_i32 = arith.constant 0 : i32
    %c0_i32_0 = arith.constant 0 : i32
    %c0_i32_1 = arith.constant 0 : i32
    return %c0_i32, %c0_i32_0 : i32, i32
  }
  func.func @transform_2(%arg0: i32) -> (i32, i32) {
    %c0_i32 = arith.constant 0 : i32
    %c0_i32_0 = arith.constant 0 : i32
    return %arg0, %c0_i32 : i32, i32
  }
  func.func @transform_3(%arg0: i32) -> (i32, i32) {
    %c0_i32 = arith.constant 0 : i32
    %c0_i32_0 = arith.constant 0 : i32
    %c0_i32_1 = arith.constant 0 : i32
    return %c0_i32, %c0_i32_0 : i32, i32
  }
}

module attributes {stable_mosaic.version = 11 : i64} {
  func.func @_loss_kernel(%arg0: i32, %arg1: i32, %arg2: memref<32x128xbf16, #tpu.memory_space<vmem>>, %arg3: memref<128x128xbf16, #tpu.memory_space<vmem>>, %arg4: memref<32x128xf32, #tpu.memory_space<vmem>>, %arg5: memref<32x128xf32, #tpu.memory_space<vmem>>, %arg6: memref<32x1xf32, #tpu.memory_space<vmem>>) attributes {dimension_semantics = [#tpu.dimension_semantics<parallel>, #tpu.dimension_semantics<arbitrary>], iteration_bounds = array<i64: 1, 1>, scalar_prefetch = 0 : i64, scratch_operands = 0 : i64, tpu.core_type = #tpu.core_type<tc>, window_params = [{transform_indices = @transform_0, window_bounds = array<i64: 32, 128>}, {transform_indices = @transform_1, window_bounds = array<i64: 128, 128>}, {transform_indices = @transform_2, window_bounds = array<i64: 32, 128>}, {transform_indices = @transform_3, window_bounds = array<i64: 32, 128>}, {transform_indices = @transform_4, window_bounds = array<i64: 32, 1>}]} {
    %c0_i32 = arith.constant 0 : i32
    %0 = arith.cmpi eq, %arg1, %c0_i32 : i32
    %1 = arith.extui %0 : i1 to i32
    %c0_i32_0 = arith.constant 0 : i32
    %2 = arith.cmpi ne, %1, %c0_i32_0 : i32
    scf.if %2 {
      %cst_14 = arith.constant 0.000000e+00 : f32
      %20 = vector.broadcast %cst_14 : f32 to vector<32x1xf32>
      %c0_15 = arith.constant 0 : index
      %c0_16 = arith.constant 0 : index
      %21 = vector.load %arg6[%c0_15, %c0_16] : memref<32x1xf32, #tpu.memory_space<vmem>>, vector<32x1xf32>
      tpu.vector_store %arg6[%c0_15, %c0_16], %20 {strides = array<i32>} : memref<32x1xf32, #tpu.memory_space<vmem>>, vector<32x1xf32>,
    } else {
    }
    %c0 = arith.constant 0 : index
    %c0_1 = arith.constant 0 : index
    %3 = vector.load %arg2[%c0, %c0_1] : memref<32x128xbf16, #tpu.memory_space<vmem>>, vector<32x128xbf16>
    %c0_2 = arith.constant 0 : index
    %c0_3 = arith.constant 0 : index
    %4 = vector.load %arg3[%c0_2, %c0_3] : memref<128x128xbf16, #tpu.memory_space<vmem>>, vector<128x128xbf16>
    %cst = arith.constant dense<0.000000e+00> : vector<32x128xf32>
    %5 = tpu.matmul %3, %4, %cst {dimension_numbers = #tpu.dot_dimension_numbers<[1], [1], [0], [0], [0, 0, 1, 0], [], []>} : vector<32x128xbf16>, vector<128x128xbf16>, vector<32x128xf32> -> vector<32x128xf32>
    %c0_4 = arith.constant 0 : index
    %c0_5 = arith.constant 0 : index
    %6 = vector.load %arg4[%c0_4, %c0_5] : memref<32x128xf32, #tpu.memory_space<vmem>>, vector<32x128xf32>
    %cst_6 = arith.constant 1.000000e+00 : f32
    %7 = vector.broadcast %cst_6 : f32 to vector<32x128xf32>
    %8 = arith.subf %7, %5 : vector<32x128xf32>
    %9 = math.absf %8 : vector<32x128xf32>
    %10 = arith.mulf %6, %9 : vector<32x128xf32>
    %c0_7 = arith.constant 0 : index
    %c0_8 = arith.constant 0 : index
    %11 = vector.load %arg5[%c0_7, %c0_8] : memref<32x128xf32, #tpu.memory_space<vmem>>, vector<32x128xf32>
    %12 = math.absf %5 : vector<32x128xf32>
    %13 = arith.mulf %11, %12 : vector<32x128xf32>
    %14 = arith.addf %10, %13 : vector<32x128xf32>
    %c0_9 = arith.constant 0 : index
    %c0_10 = arith.constant 0 : index
    %15 = vector.load %arg6[%c0_9, %c0_10] : memref<32x1xf32, #tpu.memory_space<vmem>>, vector<32x1xf32>
    %cst_11 = arith.constant dense<0.000000e+00> : vector<32xf32>
    %16 = vector.multi_reduction <add>, %14, %cst_11 [1] : vector<32x128xf32> to vector<32xf32>
    %17 = vector.shape_cast %16 : vector<32xf32> to vector<32x1xf32>
    %18 = arith.addf %15, %17 : vector<32x1xf32>
    %c0_12 = arith.constant 0 : index
    %c0_13 = arith.constant 0 : index
    %19 = vector.load %arg6[%c0_12, %c0_13] : memref<32x1xf32, #tpu.memory_space<vmem>>, vector<32x1xf32>
    tpu.vector_store %arg6[%c0_12, %c0_13], %18 {strides = array<i32>} : memref<32x1xf32, #tpu.memory_space<vmem>>, vector<32x1xf32>,
    return
  }
  func.func @transform_0(%arg0: i32, %arg1: i32) -> (i32, i32) {
    %c0_i32 = arith.constant 0 : i32
    %c0_i32_0 = arith.constant 0 : i32
    return %arg0, %c0_i32 : i32, i32
  }
  func.func @transform_1(%arg0: i32, %arg1: i32) -> (i32, i32) {
    %c0_i32 = arith.constant 0 : i32
    %c0_i32_0 = arith.constant 0 : i32
    return %arg1, %c0_i32 : i32, i32
  }
  func.func @transform_2(%arg0: i32, %arg1: i32) -> (i32, i32) {
    %c0_i32 = arith.constant 0 : i32
    return %arg0, %arg1 : i32, i32
  }
  func.func @transform_3(%arg0: i32, %arg1: i32) -> (i32, i32) {
    %c0_i32 = arith.constant 0 : i32
    return %arg0, %arg1 : i32, i32
  }
  func.func @transform_4(%arg0: i32, %arg1: i32) -> (i32, i32) {
    %c0_i32 = arith.constant 0 : i32
    %c0_i32_0 = arith.constant 0 : i32
    return %arg0, %c0_i32 : i32, i32
  }
}

</mosaic_0001>

<bundles_post_ra>
// kernel: _dino_loss_impl.4
= control target key start
LH: loop header
LB: loop body
LE: loop exit
PB: predicated region body
PF: predicated region fallthrough
CT: control target
= control target key end

     0   :  { %s762_s0 = inlined_call_operand.vmem [shape: f32[128,128], index: 0, kind: input, shape index: {}]   ;;  %s763_s1 = inlined_call_operand.vmem [shape: bf16[128,128], index: 1, kind: output, shape index: {}]  }
   0x1   :  { %v392_v0 = vld [vmem:[%s762_s0 + $0x20] sm:$0xff]  ;;  %v397_v1 = vld [vmem:[%s762_s0 + $0x10] sm:$0xff]  ;;  %v413_v6 = vld [vmem:[%s762_s0 + $0x28] sm:$0xff] }
   0x2   :  { %v402_v2 = vld [vmem:[%s762_s0] sm:$0xff]  ;;  %v28_v3 = vmul.f32 %v392_v0, %v392_v0  ;;  %v26_v4 = vmul.f32 %v397_v1, %v397_v1  ;;  %v418_v7 = vld [vmem:[%s762_s0 + $0x18] sm:$0xff]  ;;  %v423_v8 = vld [vmem:[%s762_s0 + $0x8] sm:$0xff]  ;;  %v29_v9 = vmul.f32 %v413_v6, %v413_v6 }
   0x3   :  { %v24_v5 = vmul.f32 %v402_v2, %v402_v2  ;;  %v27_v10 = vmul.f32 %v418_v7, %v418_v7  ;;  %v25_v11 = vmul.f32 %v423_v8, %v423_v8  ;;  %v434_v12 = vld [vmem:[%s762_s0 + $0x40] sm:$0xff]  ;;  %v439_v13 = vld [vmem:[%s762_s0 + $0x38] sm:$0xff]  ;;  %v444_v14 = vld [vmem:[%s762_s0 + $0x30] sm:$0xff] }
   0x4   :  { %48 = vadd.xlane.f32.xlu2 %v28_v3  ;;  %44 = vadd.xlane.f32.xlu1 %v26_v4  ;;  %v32_v15 = vmul.f32 %v434_v12, %v434_v12  ;;  %v31_v16 = vmul.f32 %v439_v13, %v439_v13  ;;  %v30_v17 = vmul.f32 %v444_v14, %v444_v14  ;;  %v455_v18 = vld [vmem:[%s762_s0 + $0x58] sm:$0xff]  ;;  %v460_v19 = vld [vmem:[%s762_s0 + $0x50] sm:$0xff]  ;;  %v465_v20 = vld [vmem:[%s762_s0 + $0x48] sm:$0xff] }
   0x5   :  { %40 = vadd.xlane.f32.xlu0 %v24_v5  ;;  %v35_v21 = vmul.f32 %v455_v18, %v455_v18  ;;  %v34_v22 = vmul.f32 %v460_v19, %v460_v19  ;;  %v33_v23 = vmul.f32 %v465_v20, %v465_v20  ;;  %v476_v24 = vld [vmem:[%s762_s0 + $0x70] sm:$0xff]  ;;  %v481_v25 = vld [vmem:[%s762_s0 + $0x68] sm:$0xff]  ;;  %v486_v26 = vld [vmem:[%s762_s0 + $0x60] sm:$0xff] }
   0x6   :  { %v38_v27 = vmul.f32 %v476_v24, %v476_v24  ;;  %v37_v28 = vmul.f32 %v481_v25, %v481_v25  ;;  %v36_v29 = vmul.f32 %v486_v26, %v486_v26  ;;  %v497_v30 = vld [vmem:[%s762_s0 + $0x78] sm:$0xff] }
   0x7   :  { %v39_v31 = vmul.f32 %v497_v30, %v497_v30 }
   0xc   :  { %50 = vadd.xlane.f32.xlu2 %v29_v9  ;;  %46 = vadd.xlane.f32.xlu1 %v27_v10 }
   0xd   :  { %42 = vadd.xlane.f32.xlu0 %v25_v11 }
  0x14   :  { %56 = vadd.xlane.f32.xlu2 %v32_v15  ;;  %54 = vadd.xlane.f32.xlu1 %v31_v16 }
  0x15   :  { %52 = vadd.xlane.f32.xlu0 %v30_v17 }
  0x1c   :  { %62 = vadd.xlane.f32.xlu2 %v35_v21  ;;  %60 = vadd.xlane.f32.xlu1 %v34_v22 }
  0x1d   :  { %58 = vadd.xlane.f32.xlu0 %v33_v23 }
  0x24   :  { %68 = vadd.xlane.f32.xlu2 %v38_v27  ;;  %66 = vadd.xlane.f32.xlu1 %v37_v28 }
  0x25   :  { %64 = vadd.xlane.f32.xlu0 %v36_v29 }
  0x2d   :  { %70 = vadd.xlane.f32.xlu0 %v39_v31 }
  0x77   :  { %v49_v32 = vpop.xlane.xlu2 %48  ;;  %v45_v33 = vpop.xlane.xlu1 %44 }
  0x78   :  { %v76_v34 = vadd.f32 1e-24, %v49_v32  ;;  %v501_v35 = vadd.f32 1e-24, %v45_v33  ;;  %v41_v36 = vpop.xlane.xlu0 %40 }
  0x79   :  { %v503_v37 = vadd.f32 1e-24, %v41_v36 }
  0x7a   :  { %347 = vrsqrt.f32 %v76_v34  ;;  %vm134_vm0 = vweird.f32 %v76_v34  ;;  %vm114_vm1 = vweird.f32 %v501_v35 }
  0x7b   :  { %349 = vrsqrt.f32 %v501_v35  ;;  %vm94_vm3 = vweird.f32 %v503_v37 }
  0x7c   :  { %351 = vrsqrt.f32 %v503_v37 }
  0x7f   :  { %v51_v38 = vpop.xlane.xlu2 %50  ;;  %v47_v39 = vpop.xlane.xlu1 %46 }
  0x80   :  { %v507_v40 = vpop.eup %347  ;;  %v509_v41 = vadd.f32 1e-24, %v51_v38  ;;  %v511_v42 = vadd.f32 1e-24, %v47_v39  ;;  %v43_v43 = vpop.xlane.xlu0 %42 }
  0x81   :  { %v513_v44 = vpop.eup %349  ;;  %v129_v45 = vmul.f32 %v507_v40, %v76_v34  ;;  %v516_v46 = vadd.f32 1e-24, %v43_v43  ;;  %vm135_vm2 = vweird.f32 %v507_v40 }
  0x82   :  { %v518_v47 = vpop.eup %351  ;;  %v109_v48 = vmul.f32 %v513_v44, %v501_v35  ;;  %353 = vrsqrt.f32 %v509_v41  ;;  %vm115_vm4 = vweird.f32 %v513_v44  ;;  %vm144_vm5 = vweird.f32 %v509_v41  ;;  %vm566_vm10 = vmor %vm134_vm0, %vm135_vm2 }
  0x83   :  { %v130_v49 = vmul.f32 %v507_v40, %v129_v45  ;;  %v89_v50 = vmul.f32 %v518_v47, %v503_v37  ;;  %355 = vrsqrt.f32 %v511_v42  ;;  %vm95_vm6 = vweird.f32 %v518_v47  ;;  %vm582_vm12 = vmor %vm114_vm1, %vm115_vm4 }
  0x84   :  { %v110_v51 = vmul.f32 %v513_v44, %v109_v48  ;;  %357 = vrsqrt.f32 %v516_v46  ;;  %vm124_vm7 = vweird.f32 %v511_v42  ;;  %vm104_vm8 = vweird.f32 %v516_v46  ;;  %vm597_vm13 = vmor %vm94_vm3, %vm95_vm6 }
  0x85   :  { %v131_v52 = vmul.f32 0.5, %v130_v49  ;;  %v90_v53 = vmul.f32 %v518_v47, %v89_v50 }
  0x86   :  { %v111_v54 = vmul.f32 0.5, %v110_v51 }
  0x87   :  { %v91_v55 = vmul.f32 0.5, %v90_v53  ;;  %v57_v56 = vpop.xlane.xlu2 %56  ;;  %v55_v57 = vpop.xlane.xlu1 %54  ;;  %v132_v59 = vsub.f32 1.5, %v131_v52 }
  0x88   :  { %v530_v58 = vpop.eup %353  ;;  %v533_v60 = vadd.f32 1e-24, %v57_v56  ;;  %v53_v61 = vpop.xlane.xlu0 %52  ;;  %v112_v63 = vsub.f32 1.5, %v111_v54  ;;  %v546_v10 = vadd.f32 1e-24, %v55_v57 }
  0x89   :  { %v535_v62 = vpop.eup %355  ;;  %v139_v3 = vmul.f32 %v530_v58, %v509_v41  ;;  %v92_v5 = vsub.f32 1.5, %v91_v55  ;;  %v133_v16 = vmul.f32 %v507_v40, %v132_v59  ;;  %vm145_vm9 = vweird.f32 %v530_v58 }
  0x8a   :  { %v541_v4 = vpop.eup %357  ;;  %v119_v9 = vmul.f32 %v535_v62, %v511_v42  ;;  %359 = vrsqrt.f32 %v533_v60  ;;  %v113_v21 = vmul.f32 %v513_v44, %v112_v63  ;;  %vm125_vm11 = vweird.f32 %v535_v62  ;;  %vm146_vm15 = vmor %vm144_vm5, %vm145_vm9 }
  0x8b   :  { %v140_v11 = vmul.f32 %v530_v58, %v139_v3  ;;  %v99_v15 = vmul.f32 %v541_v4, %v516_v46  ;;  %v93_v27 = vmul.f32 %v518_v47, %v92_v5  ;;  %361 = vrsqrt.f32 %v546_v10  ;;  %vm126_vm0 = vmor %vm124_vm7, %vm125_vm11 }
  0x8c   :  { %v120_v17 = vmul.f32 %v535_v62, %v119_v9  ;;  %v571_v33 = vadd.f32 1e-24, %v53_v61  ;;  %v137_v43 = vsel %vm566_vm10, %v507_v40, %v133_v16  ;;  %v117_v51 = vsel %vm582_vm12, %v513_v44, %v113_v21 }
  0x8d   :  { %v141_v22 = vmul.f32 0.5, %v140_v11  ;;  %v100_v23 = vmul.f32 %v541_v4, %v99_v15  ;;  %vm105_vm14 = vweird.f32 %v541_v4  ;;  %v97_v53 = vsel %vm597_vm13, %v518_v47, %v93_v27 }
  0x8e   :  { %v121_v28 = vmul.f32 0.5, %v120_v17  ;;  %363 = vrsqrt.f32 %v571_v33  ;;  %v252_v54 = vmul.f32 %v137_v43, %v392_v0  ;;  %v250_v56 = vmul.f32 %v117_v51, %v397_v1  ;;  %vm106_vm1 = vmor %vm104_vm8, %vm105_vm14 }
  0x8f   :  { %v142_v31 = vsub.f32 1.5, %v141_v22  ;;  %v101_v32 = vmul.f32 0.5, %v100_v23  ;;  %v63_v36 = vpop.xlane.xlu2 %62  ;;  %v61_v38 = vpop.xlane.xlu1 %60  ;;  %v248_v0 = vmul.f32 %v97_v53, %v402_v2  ;;  %vm164_vm2 = vweird.f32 %v546_v10 }
  0x90   :  { %v573_v39 = vpop.eup %359  ;;  %v122_v45 = vsub.f32 1.5, %v121_v28  ;;  %v586_v48 = vadd.f32 1e-24, %v63_v36  ;;  %v588_v49 = vadd.f32 1e-24, %v61_v38  ;;  %v59_v50 = vpop.xlane.xlu0 %58  ;;  %vm154_vm3 = vweird.f32 %v571_v33 }
  0x91   :  { %v143_v40 = vmul.f32 %v530_v58, %v142_v31  ;;  %v102_v52 = vsub.f32 1.5, %v101_v32  ;;  %v169_v44 = vmul.f32 %v573_v39, %v533_v60  ;;  %v622_v41 = vpop.eup %361  ;;  %v639_v63 = vadd.f32 1e-24, %v59_v50 }
  0x92   :  { %v123_v37 = vmul.f32 %v535_v62, %v122_v45  ;;  %365 = vrsqrt.f32 %v586_v48  ;;  %v159_v1 = vmul.f32 %v622_v41, %v546_v10  ;;  %vm174_vm4 = vweird.f32 %v533_v60 }
  0x93   :  { %v147_v55 = vsel %vm146_vm15, %v530_v58, %v143_v40  ;;  %v103_v47 = vmul.f32 %v541_v4, %v102_v52  ;;  %367 = vrsqrt.f32 %v588_v49  ;;  %vm175_vm5 = vweird.f32 %v573_v39 }
  0x94   :  { %v253_v57 = vmul.f32 %v147_v55, %v413_v6  ;;  %v127_v59 = vsel %vm126_vm0, %v535_v62, %v123_v37  ;;  %v170_v62 = vmul.f32 %v573_v39, %v169_v44  ;;  %v160_v3 = vmul.f32 %v622_v41, %v159_v1  ;;  %v642_v9 = vpop.eup %363 }
  0x95   :  { %v251_v42 = vmul.f32 %v127_v59, %v418_v7  ;;  %v107_v58 = vsel %vm106_vm1, %v541_v4, %v103_v47  ;;  %369 = vrsqrt.f32 %v639_v63  ;;  %v149_v15 = vmul.f32 %v642_v9, %v571_v33  ;;  %vm722_vm1 = vmor %vm174_vm4, %vm175_vm5 }
  0x96   :  { %v313_v61 = vpack.c.bf16 %v253_v57, %v252_v54  ;;  %v249_v6 = vmul.f32 %v107_v58, %v423_v8  ;;  %v161_v11 = vmul.f32 0.5, %v160_v3  ;;  %v171_v21 = vmul.f32 0.5, %v170_v62 }
  0x97   :  { %v308_v46 = vpack.c.bf16 %v251_v42, %v250_v56  ;;  %v69_v5 = vpop.xlane.xlu2 %68  ;;  %v67_v16 = vpop.xlane.xlu1 %66  ;;  %vm165_vm6 = vweird.f32 %v622_v41  ;;  %v150_v27 = vmul.f32 %v642_v9, %v149_v15  ;;  %vm204_vm7 = vweird.f32 %v586_v48 }
  0x98   :  { %341 = vst [vmem:[%s763_s1 + $0x10] sm:$0xff] %v313_v61   ;;  %v303_v2 = vpack.c.bf16 %v249_v6, %v248_v0  ;;  %v648_v7 = vadd.f32 1e-24, %v69_v5  ;;  %v65_v8 = vpop.xlane.xlu0 %64  ;;  %v366_v4 = vpop.eup %365  ;;  %v162_v23 = vsub.f32 1.5, %v161_v11  ;;  %vm194_vm8 = vweird.f32 %v588_v49  ;;  %vm680_vm9 = vmor %vm164_vm2, %vm165_vm6 }
  0x99   :  { %340 = vst [vmem:[%s763_s1 + $0x8] sm:$0xff] %v308_v46   ;;  %v656_v17 = vpop.eup %367  ;;  %v199_v22 = vmul.f32 %v366_v4, %v586_v48  ;;  %v672_v31 = vadd.f32 1e-24, %v67_v16  ;;  %v151_v36 = vmul.f32 0.5, %v150_v27  ;;  %v676_v43 = vadd.f32 1e-24, %v65_v8 }
  0x9a   :  { %304 = vst [vmem:[%s763_s1] sm:$0xff] %v303_v2   ;;  %371 = vrsqrt.f32 %v648_v7  ;;  %v189_v28 = vmul.f32 %v656_v17, %v588_v49  ;;  %v163_v32 = vmul.f32 %v622_v41, %v162_v23  ;;  %v172_v45 = vsub.f32 1.5, %v171_v21 }
  0x9b   :  { %v200_v29 = vmul.f32 %v366_v4, %v199_v22  ;;  %v370_v34 = vpop.eup %369  ;;  %vm155_vm10 = vweird.f32 %v642_v9  ;;  %373 = vrsqrt.f32 %v672_v31  ;;  %v152_v40 = vsub.f32 1.5, %v151_v36 }
  0x9c   :  { %v190_v38 = vmul.f32 %v656_v17, %v189_v28  ;;  %v167_v35 = vsel %vm680_vm9, %v622_v41, %v163_v32  ;;  %v179_v53 = vmul.f32 %v370_v34, %v639_v63  ;;  %vm205_vm11 = vweird.f32 %v366_v4  ;;  %vm156_vm13 = vmor %vm154_vm3, %vm155_vm10 }
  0x9d   :  { %v201_v51 = vmul.f32 0.5, %v200_v29  ;;  %vm195_vm12 = vweird.f32 %v656_v17  ;;  %375 = vrsqrt.f32 %v676_v43  ;;  %v153_v54 = vmul.f32 %v642_v9, %v152_v40  ;;  %vm206_vm14 = vmor %vm204_vm7, %vm205_vm11 }
  0x9e   :  { %v191_v52 = vmul.f32 0.5, %v190_v38  ;;  %v180_v47 = vmul.f32 %v370_v34, %v179_v53  ;;  %v173_v56 = vmul.f32 %v573_v39, %v172_v45  ;;  %v255_v57 = vmul.f32 %v167_v35, %v439_v13  ;;  %vm196_vm15 = vmor %vm194_vm8, %vm195_vm12 }
  0x9f   :  { %v202_v10 = vsub.f32 1.5, %v201_v51  ;;  %v157_v42 = vsel %vm156_vm13, %v642_v9, %v153_v54  ;;  %vm185_vm0 = vweird.f32 %v370_v34  ;;  %vm184_vm2 = vweird.f32 %v639_v63 }
  0xa0   :  { %v690_v37 = vpop.eup %371  ;;  %v71_v44 = vpop.xlane.xlu0 %70  ;;  %v192_v55 = vsub.f32 1.5, %v191_v52  ;;  %v181_v1 = vmul.f32 0.5, %v180_v47  ;;  %v254_v13 = vmul.f32 %v157_v42, %v444_v14  ;;  %v177_v9 = vsel %vm722_vm1, %v573_v39, %v173_v56  ;;  %vm186_vm3 = vmor %vm184_vm2, %vm185_vm0 }
  0xa1   :  { %v229_v41 = vmul.f32 %v690_v37, %v648_v7  ;;  %v203_v59 = vmul.f32 %v366_v4, %v202_v10  ;;  %v703_v0 = vadd.f32 1e-24, %v71_v44  ;;  %v374_v6 = vpop.eup %373  ;;  %v256_v16 = vmul.f32 %v177_v9, %v434_v12 }
  0xa2   :  { %v193_v58 = vmul.f32 %v656_v17, %v192_v55  ;;  %v182_v46 = vsub.f32 1.5, %v181_v1  ;;  %v318_v5 = vpack.c.bf16 %v255_v57, %v254_v13  ;;  %vm224_vm4 = vweird.f32 %v672_v31 }
  0xa3   :  { %v230_v61 = vmul.f32 %v690_v37, %v229_v41  ;;  %v207_v62 = vsel %vm206_vm14, %v366_v4, %v203_v59  ;;  %377 = vrsqrt.f32 %v703_v0  ;;  %v376_v3 = vpop.eup %375  ;;  %vm225_vm5 = vweird.f32 %v374_v6 }
  0xa4   :  { %v259_v33 = vmul.f32 %v207_v62, %v455_v18  ;;  %v197_v48 = vsel %vm196_vm15, %v656_v17, %v193_v58  ;;  %v219_v18 = vmul.f32 %v374_v6, %v672_v31  ;;  %v183_v2 = vmul.f32 %v370_v34, %v182_v46  ;;  %342 = vst [vmem:[%s763_s1 + $0x18] sm:$0xff] %v318_v5   ;;  %vm226_vm9 = vmor %vm224_vm4, %vm225_vm5 }
  0xa5   :  { %v258_v49 = vmul.f32 %v197_v48, %v460_v19  ;;  %v231_v8 = vmul.f32 0.5, %v230_v61  ;;  %v209_v4 = vmul.f32 %v376_v3, %v676_v43  ;;  %vm215_vm6 = vweird.f32 %v376_v3 }
  0xa6   :  { %v220_v11 = vmul.f32 %v374_v6, %v219_v18  ;;  %v187_v19 = vsel %vm186_vm3, %v370_v34, %v183_v2  ;;  %vm234_vm7 = vweird.f32 %v648_v7  ;;  %vm235_vm8 = vweird.f32 %v690_v37 }
  0xa7   :  { %v328_v60 = vpack.c.bf16 %v259_v33, %v258_v49  ;;  %v210_v15 = vmul.f32 %v376_v3, %v209_v4  ;;  %v257_v39 = vmul.f32 %v187_v19, %v465_v20  ;;  %v232_v21 = vsub.f32 1.5, %v231_v8  ;;  %vm236_vm13 = vmor %vm234_vm7, %vm235_vm8 }
  0xa8   :  { %v221_v17 = vmul.f32 0.5, %v220_v11  ;;  %vm214_vm10 = vweird.f32 %v676_v43  ;;  %vm244_vm14 = vweird.f32 %v703_v0 }
  0xa9   :  { %v378_v63 = vpop.eup %377  ;;  %344 = vst [vmem:[%s763_s1 + $0x28] sm:$0xff] %v328_v60   ;;  %v211_v22 = vmul.f32 0.5, %v210_v15  ;;  %v323_v27 = vpack.c.bf16 %v257_v39, %v256_v16  ;;  %v233_v20 = vmul.f32 %v690_v37, %v232_v21  ;;  %vm216_vm11 = vmor %vm214_vm10, %vm215_vm6 }
  0xaa   :  { %v239_v23 = vmul.f32 %v378_v63, %v703_v0  ;;  %v222_v28 = vsub.f32 1.5, %v221_v17  ;;  %vm245_vm12 = vweird.f32 %v378_v63 }
  0xab   :  { %v212_v29 = vsub.f32 1.5, %v211_v22  ;;  %343 = vst [vmem:[%s763_s1 + $0x20] sm:$0xff] %v323_v27   ;;  %v237_v51 = vsel %vm236_vm13, %v690_v37, %v233_v20  ;;  %vm246_vm15 = vmor %vm244_vm14, %vm245_vm12 }
  0xac   :  { %v240_v32 = vmul.f32 %v378_v63, %v239_v23  ;;  %v223_v12 = vmul.f32 %v374_v6, %v222_v28  ;;  %v262_v43 = vmul.f32 %v237_v51, %v476_v24 }
  0xad   :  { %v213_v36 = vmul.f32 %v376_v3, %v212_v29 }
  0xae   :  { %v241_v31 = vmul.f32 0.5, %v240_v32  ;;  %v227_v38 = vsel %vm226_vm9, %v374_v6, %v223_v12 }
  0xaf   :  { %v261_v34 = vmul.f32 %v227_v38, %v481_v25  ;;  %v217_v45 = vsel %vm216_vm11, %v376_v3, %v213_v36 }
  0xb0   :  { %v242_v50 = vsub.f32 1.5, %v241_v31  ;;  %v260_v7 = vmul.f32 %v217_v45, %v486_v26 }
  0xb2   :  { %v243_v35 = vmul.f32 %v378_v63, %v242_v50  ;;  %v333_v40 = vpack.c.bf16 %v261_v34, %v260_v7 }
  0xb4   :  { %v247_v52 = vsel %vm246_vm15, %v378_v63, %v243_v35  ;;  %345 = vst [vmem:[%s763_s1 + $0x30] sm:$0xff] %v333_v40  }
  0xb5   :  { %v263_v25 = vmul.f32 %v247_v52, %v497_v30 }
  0xb7   :  { %v338_v53 = vpack.c.bf16 %v263_v25, %v262_v43 }
  0xb9   :  { %346 = vst [vmem:[%s763_s1 + $0x38] sm:$0xff] %v338_v53  }

// kernel: _dino_loss_impl.3
= control target key start
LH: loop header
LB: loop body
LE: loop exit
PB: predicated region body
PF: predicated region fallthrough
CT: control target
= control target key end

     0   :  { %9 = vsyncpa [#allocation3], 0  ;;  %s369_s0 = inlined_call_operand.hbm [shape: f32[32,128], index: 0, kind: input, shape index: {}]   ;;  %s370_s1 = inlined_call_operand.hbm [shape: f32[1,128], index: 1, kind: input, shape index: {}]   ;;  %s371_s2 = inlined_call_operand.vmem [shape: bf16[32,128], index: 2, kind: output, shape index: {0}]   ;;  %s372_s3 = inlined_call_operand.hbm [shape: f32[1,128], index: 3, kind: output, shape index: {1}]  }
   0x1   :  { %10 = vsyncpa [#allocation6], 0 }
   0x2   :  { %11 = vsyncpa [#allocation4], 0  ;;  %s16_s14 = sshll.u32 %s369_s0, 4  ;;  %s308_s15 = smov [#allocation2]   ;;  %s17_s14 = int_to_ptr.hbm [resolvable:$true] %s16_s14 }
   0x3   :  { %s18_s16 = sshll.u32 %s308_s15, 4  ;;  %s30_s19 = sshll.u32 %s370_s1, 4  ;;  %s19_s16 = int_to_ptr.vmem [resolvable:$true] %s18_s16  ;;  %s31_s19 = int_to_ptr.hbm [resolvable:$true] %s30_s19 }
   0x4   :  { %s309_s20 = smov 128   ;;  %s310_s21 = smov 8  }
   0x5   :  { %24 = dma.hbm_to_vmem [thread:$0]  %s17_s14, 512, %s19_s16, [#allocation3], %s309_s20, %s309_s20, %s310_s21  }
   0x6   :  { %s311_s22 = smov [#allocation5]  }
   0x7   :  { %s32_s23 = sshll.u32 %s311_s22, 4  ;;  %s33_s23 = int_to_ptr.vmem [resolvable:$true] %s32_s23 }
   0x8   :  { %35 = dma.hbm_to_vmem [thread:$0]  %s31_s19, 16, %s33_s23, [#allocation6]  }
   0x9   :  { %302 = dma.done.wait [#allocation3], 512  }
   0xa   :  { %303 = vsyncadd [#allocation3], 4294966784 }
   0xb   :  { %304 = dma.done.wait [#allocation6], 16  }
   0xc   :  { %305 = vsyncadd [#allocation6], 4294967280  ;;  %v46_v0 = vld [vmem:[#allocation2 + $0x10] sm:$0xff]  ;;  %v213_v1 = vld [vmem:[#allocation5] ss:$0 sm:$0xff]  ;;  %v312_v41 = vmov 0.0  }
   0xd   :  { %v44_v2 = vld [vmem:[#allocation2] sm:$0xff]  ;;  %v54_v3 = vsub.f32 %v46_v0, %v213_v1  ;;  %v45_v5 = vld [vmem:[#allocation2 + $0x8] sm:$0xff]  ;;  %v47_v6 = vld [vmem:[#allocation2 + $0x18] sm:$0xff]  ;;  %152 = vst [vmem:[#allocation7] sm:$0x1] %v312_v41  ;;  %s313_s0 = smov [#allocation7]  }
   0xe   :  { %v52_v4 = vsub.f32 %v44_v2, %v213_v1  ;;  %v154_v7 = vadd.f32 %v45_v5, %v44_v2  ;;  %v55_v11 = vsub.f32 %v47_v6, %v213_v1  ;;  %v53_v12 = vsub.f32 %v45_v5, %v213_v1  ;;  %v168_v45 = vld [vmem:[#allocation5] sm:$0x1]  ;;  %s181_s1 = sshll.u32 %s313_s0, 4  ;;  %s183_s26 = sshll.u32 %s372_s3, 4  ;;  %s182_s1 = int_to_ptr.vmem [resolvable:$true] %s181_s1  ;;  %s184_s26 = int_to_ptr.hbm [resolvable:$true] %s183_s26 }
   0xf   :  { %v58_v8 = vmul.f32 50.0, %v54_v3  ;;  %v169_v47 = vmul.f32 0.9, %v168_v45 }
  0x10   :  { %v56_v9 = vmul.f32 50.0, %v52_v4  ;;  %v155_v10 = vadd.f32 %v154_v7, %v46_v0  ;;  %v59_v14 = vmul.f32 50.0, %v55_v11  ;;  %v57_v15 = vmul.f32 50.0, %v53_v12 }
  0x11   :  { %64 = vmax.xlane.f32.xlu1 %v58_v8 }
  0x12   :  { %60 = vmax.xlane.f32.xlu0 %v56_v9  ;;  %v156_v13 = vadd.f32 %v155_v10, %v47_v6 }
  0x14   :  { %v157_v36 = vrot.slane %v156_v13, 4  ;;  %v153_v43 = vld [vmem:[#allocation7] sm:$0x1] }
  0x16   :  { %v158_v37 = vadd.f32 %v157_v36, %v156_v13 }
  0x18   :  { %v159_v38 = vrot.slane %v158_v37, 2 }
  0x19   :  { %66 = vmax.xlane.f32.xlu1 %v59_v14 }
  0x1a   :  { %62 = vmax.xlane.f32.xlu0 %v57_v15  ;;  %v160_v39 = vadd.f32 %v159_v38, %v158_v37 }
  0x1c   :  { %v161_v40 = vrot.slane %v160_v39, 1 }
  0x1e   :  { %v162_v42 = vadd.f32 %v161_v40, %v160_v39 }
  0x20   :  { %v163_v44 = vadd.f32 %v162_v42, %v153_v43 }
  0x22   :  { %164 = vst [vmem:[#allocation7] sm:$0x1] %v163_v44 }
  0x29   :  { %v170_v46 = vld [vmem:[#allocation7] sm:$0x1] }
  0x2a   :  { %v171_v48 = vmul.f32 0.003125, %v170_v46 }
  0x2c   :  { %v172_v49 = vadd.f32 %v171_v48, %v169_v47 }
  0x2e   :  { %173 = vst [vmem:[#allocation7] sm:$0x1] %v172_v49 }
  0x2f   :  { %186 = dma.vmem_to_hbm [thread:$0]  %s182_s1, 16, %s184_s26, [#allocation4]  }
  0x84   :  { %v65_v16 = vpop.xlane.xlu1 %64 }
  0x85   :  { %v61_v17 = vpop.xlane.xlu0 %60  ;;  %v70_v18 = vsub.f32 %v58_v8, %v65_v16 }
  0x86   :  { %v68_v19 = vsub.f32 %v56_v9, %v61_v17 }
  0x87   :  { %v76_v20 = vmul.f32 1.442695, %v70_v18 }
  0x88   :  { %v72_v21 = vmul.f32 1.442695, %v68_v19 }
  0x89   :  { %214 = vpow2.f32 %v76_v20 }
  0x8a   :  { %216 = vpow2.f32 %v72_v21 }
  0x8c   :  { %v67_v22 = vpop.xlane.xlu1 %66 }
  0x8d   :  { %v63_v23 = vpop.xlane.xlu0 %62  ;;  %v71_v24 = vsub.f32 %v59_v14, %v67_v22 }
  0x8e   :  { %v69_v25 = vsub.f32 %v57_v15, %v63_v23 }
  0x8f   :  { %v340_v26 = vpop.eup %214  ;;  %v78_v27 = vmul.f32 1.442695, %v71_v24 }
  0x90   :  { %v74_v28 = vmul.f32 1.442695, %v69_v25  ;;  %v342_v29 = vpop.eup %216  ;;  %v82_v30 = vmul.f32 %v340_v26, %v340_v26 }
  0x91   :  { %218 = vpow2.f32 %v78_v27  ;;  %v80_v31 = vmul.f32 %v342_v29, %v342_v29 }
  0x92   :  { %220 = vpow2.f32 %v74_v28  ;;  %88 = vadd.xlane.f32.xlu0 %v82_v30 }
  0x93   :  { %84 = vadd.xlane.f32.xlu2 %v80_v31 }
  0x97   :  { %v348_v32 = vpop.eup %218 }
  0x98   :  { %v350_v33 = vpop.eup %220  ;;  %v83_v34 = vmul.f32 %v348_v32, %v348_v32 }
  0x99   :  { %v81_v35 = vmul.f32 %v350_v33, %v350_v33 }
  0x9a   :  { %90 = vadd.xlane.f32.xlu1 %v83_v34 }
  0x9b   :  { %86 = vadd.xlane.f32.xlu2 %v81_v35 }
 0x105   :  { %v89_v50 = vpop.xlane.xlu0 %88 }
 0x106   :  { %v85_v51 = vpop.xlane.xlu2 %84  ;;  %v94_v52 = vadd.f32 1e-24, %v89_v50 }
 0x107   :  { %v92_v53 = vadd.f32 1e-24, %v85_v51 }
 0x108   :  { %222 = vrsqrt.f32 %v94_v52  ;;  %vm122_vm2 = vweird.f32 %v94_v52 }
 0x109   :  { %224 = vrsqrt.f32 %v92_v53  ;;  %vm102_vm4 = vweird.f32 %v92_v53 }
 0x10d   :  { %v91_v54 = vpop.xlane.xlu1 %90 }
 0x10e   :  { %v223_v55 = vpop.eup %222  ;;  %v95_v56 = vadd.f32 1e-24, %v91_v54  ;;  %v87_v57 = vpop.xlane.xlu2 %86 }
 0x10f   :  { %v225_v58 = vpop.eup %224  ;;  %v117_v59 = vmul.f32 %v223_v55, %v94_v52  ;;  %v93_v60 = vadd.f32 1e-24, %v87_v57  ;;  %vm123_vm0 = vweird.f32 %v223_v55 }
 0x110   :  { %v97_v61 = vmul.f32 %v225_v58, %v92_v53  ;;  %226 = vrsqrt.f32 %v95_v56  ;;  %vm103_vm1 = vweird.f32 %v225_v58  ;;  %vm124_vm5 = vmor %vm122_vm2, %vm123_vm0  ;;  %vm132_vm8 = vweird.f32 %v95_v56 }
 0x111   :  { %v118_v62 = vmul.f32 %v223_v55, %v117_v59  ;;  %228 = vrsqrt.f32 %v93_v60  ;;  %vm104_vm7 = vmor %vm102_vm4, %vm103_vm1  ;;  %vm112_vm10 = vweird.f32 %v93_v60 }
 0x112   :  { %v98_v63 = vmul.f32 %v225_v58, %v97_v61 }
 0x113   :  { %v119_v0 = vmul.f32 0.5, %v118_v62 }
 0x114   :  { %v99_v1 = vmul.f32 0.5, %v98_v63 }
 0x115   :  { %v120_v4 = vsub.f32 1.5, %v119_v0 }
 0x116   :  { %v227_v2 = vpop.eup %226  ;;  %v100_v6 = vsub.f32 1.5, %v99_v1 }
 0x117   :  { %v229_v3 = vpop.eup %228  ;;  %v127_v5 = vmul.f32 %v227_v2, %v95_v56  ;;  %v121_v10 = vmul.f32 %v223_v55, %v120_v4  ;;  %vm133_vm3 = vweird.f32 %v227_v2 }
 0x118   :  { %v107_v7 = vmul.f32 %v229_v3, %v93_v60  ;;  %v101_v12 = vmul.f32 %v225_v58, %v100_v6  ;;  %vm113_vm6 = vweird.f32 %v229_v3  ;;  %vm134_vm9 = vmor %vm132_vm8, %vm133_vm3 }
 0x119   :  { %v128_v8 = vmul.f32 %v227_v2, %v127_v5  ;;  %v125_v16 = vsel %vm124_vm5, %v223_v55, %v121_v10  ;;  %vm114_vm11 = vmor %vm112_vm10, %vm113_vm6 }
 0x11a   :  { %v108_v9 = vmul.f32 %v229_v3, %v107_v7  ;;  %v105_v18 = vsel %vm104_vm7, %v225_v58, %v101_v12  ;;  %v138_v21 = vmul.f32 %v340_v26, %v125_v16 }
 0x11b   :  { %v129_v11 = vmul.f32 0.5, %v128_v8  ;;  %v136_v24 = vmul.f32 %v342_v29, %v105_v18 }
 0x11c   :  { %v109_v13 = vmul.f32 0.5, %v108_v9 }
 0x11d   :  { %v130_v14 = vsub.f32 1.5, %v129_v11 }
 0x11e   :  { %v110_v15 = vsub.f32 1.5, %v109_v13 }
 0x11f   :  { %v131_v17 = vmul.f32 %v227_v2, %v130_v14 }
 0x120   :  { %v111_v19 = vmul.f32 %v229_v3, %v110_v15 }
 0x121   :  { %v135_v20 = vsel %vm134_vm9, %v227_v2, %v131_v17 }
 0x122   :  { %v139_v22 = vmul.f32 %v348_v32, %v135_v20  ;;  %v115_v23 = vsel %vm114_vm11, %v229_v3, %v111_v19 }
 0x123   :  { %v137_v25 = vmul.f32 %v350_v33, %v115_v23 }
 0x124   :  { %v204_v27 = vpack.c.bf16 %v139_v22, %v138_v21 }
 0x125   :  { %v199_v28 = vpack.c.bf16 %v137_v25, %v136_v24 }
 0x126   :  { %206 = vst [vmem:[%s371_s2 + $0x8] sm:$0xff] %v204_v27  }
 0x127   :  { %200 = vst [vmem:[%s371_s2] sm:$0xff] %v199_v28  }
 0x128   :  { %306 = dma.done.wait [#allocation4], 16  }
 0x129   :  { %307 = vsyncadd [#allocation4], 4294967280 }
 0x12a   :  { %193 = vsyncpa [#allocation3], 1 }
 0x12b   :  { %194 = vsyncpa [#allocation6], 1 }
 0x12c   :  { %195 = vsyncpa [#allocation4], 1 }

// kernel: _dino_loss_impl.5
= control target key start
LH: loop header
LB: loop body
LE: loop exit
PB: predicated region body
PF: predicated region fallthrough
CT: control target
= control target key end

     0   :  { %vm21_vm0 = vcmask 7168   ;;  %v241_v10 = vmov 0.0   ;;  %s365_s1 = inlined_call_operand.vmem [shape: bf16[128,128], index: 1, kind: input, shape index: {}]   ;;  %s366_s0 = inlined_call_operand.vmem [shape: bf16[32,128], index: 0, kind: input, shape index: {}]   ;;  %s367_s4 = inlined_call_operand.vmem [shape: f32[32,1], index: 4, kind: output, shape index: {}]   ;;  %s368_s3 = inlined_call_operand.vmem [shape: f32[32,128], index: 3, kind: input, shape index: {}]   ;;  %s369_s2 = inlined_call_operand.vmem [shape: f32[32,128], index: 2, kind: input, shape index: {}]  }
   0x1   :  { %v231_v0 = vld [vmem:[%s365_s1 + $0x38] sm:$0xff]  ;;  %v230_v1 = vld [vmem:[%s365_s1 + $0x30] sm:$0xff]  ;;  %v229_v2 = vld [vmem:[%s365_s1 + $0x28] sm:$0xff]  ;;  %24 = vst.msk [vmem:[%s367_s4 + $0x10] sm:$0xff] %vm21_vm0, %v241_v10 }
   0x2   :  { %106 = vmatpush.bf16.xpose.msra.mxu0 %v231_v0  ;;  %232 = vmatpush.bf16.xpose.msra.mxu1 %v231_v0  ;;  %v228_v3 = vld [vmem:[%s365_s1 + $0x20] sm:$0xff]  ;;  %v227_v4 = vld [vmem:[%s365_s1 + $0x18] sm:$0xff]  ;;  %v226_v5 = vld [vmem:[%s365_s1 + $0x10] sm:$0xff]  ;;  %22 = vst.msk [vmem:[%s367_s4] sm:$0xff] %vm21_vm0, %v241_v10 }
   0x3   :  { %v225_v6 = vld [vmem:[%s365_s1 + $0x8] sm:$0xff]  ;;  %v224_v7 = vld [vmem:[%s365_s1] sm:$0xff]  ;;  %23 = vst.msk [vmem:[%s367_s4 + $0x8] sm:$0xff] %vm21_vm0, %v241_v10  ;;  %v143_v13 = vld [vmem:[%s368_s3 + $0x10] sm:$0xff] }
   0x4   :  { %v222_v8 = vld [vmem:[%s366_s0] sm:$0xff]  ;;  %v223_v9 = vld [vmem:[%s366_s0 + $0x8] sm:$0xff]  ;;  %25 = vst.msk [vmem:[%s367_s4 + $0x18] sm:$0xff] %vm21_vm0, %v241_v10  ;;  %v127_v18 = vld [vmem:[%s369_s2 + $0x10] sm:$0xff] }
   0x5   :  { %v125_v19 = vld [vmem:[%s369_s2] sm:$0xff]  ;;  %v126_v30 = vld [vmem:[%s369_s2 + $0x8] sm:$0xff]  ;;  %v128_v37 = vld [vmem:[%s369_s2 + $0x18] sm:$0xff] }
   0x6   :  { %v141_v20 = vld [vmem:[%s368_s3] sm:$0xff]  ;;  %v142_v36 = vld [vmem:[%s368_s3 + $0x8] sm:$0xff]  ;;  %v144_v38 = vld [vmem:[%s368_s3 + $0x18] sm:$0xff] }
   0x8   :  { %v159_v47 = vld [vmem:[%s367_s4 + $0x10] sm:$0xff] }
   0x9   :  { %v157_v48 = vld [vmem:[%s367_s4] sm:$0xff] }
   0xa   :  { %107 = vmatpush.bf16.xpose.msra.mxu0 %v230_v1  ;;  %233 = vmatpush.bf16.xpose.msra.mxu1 %v230_v1  ;;  %v158_v54 = vld [vmem:[%s367_s4 + $0x8] sm:$0xff] }
   0xb   :  { %v160_v53 = vld [vmem:[%s367_s4 + $0x18] sm:$0xff] }
  0x12   :  { %108 = vmatpush.bf16.xpose.msra.mxu0 %v229_v2  ;;  %234 = vmatpush.bf16.xpose.msra.mxu1 %v229_v2 }
  0x1a   :  { %109 = vmatpush.bf16.xpose.msra.mxu0 %v228_v3  ;;  %235 = vmatpush.bf16.xpose.msra.mxu1 %v228_v3 }
  0x22   :  { %110 = vmatpush.bf16.xpose.msra.mxu0 %v227_v4  ;;  %236 = vmatpush.bf16.xpose.msra.mxu1 %v227_v4 }
  0x2a   :  { %111 = vmatpush.bf16.xpose.msra.mxu0 %v226_v5  ;;  %237 = vmatpush.bf16.xpose.msra.mxu1 %v226_v5 }
  0x32   :  { %112 = vmatpush.bf16.xpose.msra.mxu0 %v225_v6  ;;  %238 = vmatpush.bf16.xpose.msra.mxu1 %v225_v6 }
  0x3a   :  { %113 = vmatpush.bf16.xpose.msra.mxu0 %v224_v7  ;;  %239 = vmatpush.bf16.xpose.msra.mxu1 %v224_v7 }
  0x41   :  { %114 = vmatmul.bf16.vlgmr.msra.gmra.mxu0 %v222_v8  ;;  %119 = vmatmul.bf16.vlgmr.msra.gmra.mxu1 %v223_v9 }
  0xbe   :  { %v115_v11 = vpop.f32.mrf.mxu0  ;;  %v120_v12 = vpop.f32.mrf.mxu1 }
  0xbf   :  { %v129_v14 = vsub.f32 1.0, %v115_v11  ;;  %v145_v15 = vand.u32 2147483647, %v115_v11  ;;  %v131_v16 = vsub.f32 1.0, %v120_v12  ;;  %v147_v17 = vand.u32 2147483647, %v120_v12 }
  0xc1   :  { %v133_v21 = vand.u32 2147483647, %v129_v14  ;;  %v135_v22 = vand.u32 2147483647, %v131_v16  ;;  %v151_v24 = vmul.f32 %v147_v17, %v143_v13  ;;  %v149_v26 = vmul.f32 %v145_v15, %v141_v20 }
  0xc3   :  { %v139_v23 = vmul.f32 %v135_v22, %v127_v18  ;;  %v137_v25 = vmul.f32 %v133_v21, %v125_v19 }
  0xc5   :  { %v155_v27 = vadd.f32 %v151_v24, %v139_v23  ;;  %v153_v28 = vadd.f32 %v149_v26, %v137_v25 }
  0xc6   :  { %v117_v29 = vpop.f32.mrf.mxu0  ;;  %v122_v31 = vpop.f32.mrf.mxu1 }
  0xc7   :  { %v130_v32 = vsub.f32 1.0, %v117_v29  ;;  %v146_v33 = vand.u32 2147483647, %v117_v29  ;;  %v132_v34 = vsub.f32 1.0, %v122_v31  ;;  %v148_v35 = vand.u32 2147483647, %v122_v31  ;;  %165 = vadd.xlane.f32.xlu1 %v155_v27  ;;  %161 = vadd.xlane.f32.xlu0 %v153_v28 }
  0xc9   :  { %v134_v39 = vand.u32 2147483647, %v130_v32  ;;  %v136_v40 = vand.u32 2147483647, %v132_v34  ;;  %v150_v42 = vmul.f32 %v146_v33, %v142_v36  ;;  %v152_v44 = vmul.f32 %v148_v35, %v144_v38 }
  0xcb   :  { %v138_v41 = vmul.f32 %v134_v39, %v126_v30  ;;  %v140_v43 = vmul.f32 %v136_v40, %v128_v37 }
  0xcd   :  { %v156_v45 = vadd.f32 %v152_v44, %v140_v43  ;;  %v154_v46 = vadd.f32 %v150_v42, %v138_v41 }
  0xcf   :  { %167 = vadd.xlane.f32.xlu1 %v156_v45  ;;  %163 = vadd.xlane.f32.xlu0 %v154_v46 }
 0x13a   :  { %v166_v49 = vpop.xlane.xlu1 %165  ;;  %v162_v50 = vpop.xlane.xlu0 %161 }
 0x13b   :  { %v171_v51 = vadd.f32 %v166_v49, %v159_v47  ;;  %v169_v52 = vadd.f32 %v162_v50, %v157_v48 }
 0x13d   :  { %176 = vst.msk [vmem:[%s367_s4 + $0x10] sm:$0xff] %vm21_vm0, %v171_v51 }
 0x13e   :  { %174 = vst.msk [vmem:[%s367_s4] sm:$0xff] %vm21_vm0, %v169_v52 }
 0x142   :  { %v168_v55 = vpop.xlane.xlu1 %167  ;;  %v164_v56 = vpop.xlane.xlu0 %163 }
 0x143   :  { %v172_v57 = vadd.f32 %v168_v55, %v160_v53  ;;  %v170_v58 = vadd.f32 %v164_v56, %v158_v54 }
 0x145   :  { %177 = vst.msk [vmem:[%s367_s4 + $0x18] sm:$0xff] %vm21_vm0, %v172_v57 }
 0x146   :  { %175 = vst.msk [vmem:[%s367_s4 + $0x8] sm:$0xff] %vm21_vm0, %v170_v58 }

</bundles_post_ra>
